<compile_context>
chip_gen: v7x
topology: tpu7x:2x2x1
jax: 0.10.0
libtpu: 0.0.40
codegen_flags: <defaults>
</compile_context>

<pallas_src>
import math

import jax
import jax.numpy as jnp
from jax import lax
from jax.experimental import pallas as pl
from jax.experimental.pallas import tpu as pltpu

F32 = jnp.float32
EPS = 1e-6
VMEM = pltpu.MemorySpace.VMEM


def _vspec():
    return pl.BlockSpec(memory_space=VMEM)


def _full_spec(a):
    nd = a.ndim
    return pl.BlockSpec(a.shape, lambda *_: (0,) * nd)


def _pick_tm(m, cap=256):
    """Largest divisor of m that is <= cap while keeping >= 2 grid steps."""
    best = m if m <= cap else 1
    for t in range(1, min(m, cap) + 1):
        if m % t == 0 and m // t >= 2:
            best = t
    return best


# ----------------------------------------------------------------------------
# Value-level helpers used inside kernels
# ----------------------------------------------------------------------------
def _rms_val(x, g):
    ms = jnp.mean(x * x, axis=-1, keepdims=True)
    return x * lax.rsqrt(ms + EPS) * g


def _mlp_val(x, g, w1, b1, w2, b2):
    h = jnp.einsum("mne,ef->mnf", _rms_val(x, g), w1,
                   preferred_element_type=F32) + b1
    h = h * jax.nn.sigmoid(h)
    return jnp.einsum("mnf,fe->mne", h, w2, preferred_element_type=F32) + b2


def _mha(xq, xkv, wq, bq, wk, bk, wv, bv, wo, bo, bias, n_head):
    """Multi-head attention with per-head projection weights.

    xq: (m,nq,E) normalized query input; xkv: (m,nk,E) key/value input.
    wq/wk/wv: (H,E,dh); bq/bk/bv: (H,1,dh); wo: (H,dh,E); bias: (nq,nk).
    Only full-width einsums / elementwise ops; no lane slicing."""
    dh = wq.shape[-1]
    scale = 1.0 / math.sqrt(dh)
    out = None
    for h in range(n_head):
        q = jnp.einsum("mne,ed->mnd", xq, wq[h],
                       preferred_element_type=F32) + bq[h]
        k = jnp.einsum("mke,ed->mkd", xkv, wk[h],
                       preferred_element_type=F32) + bk[h]
        v = jnp.einsum("mke,ed->mkd", xkv, wv[h],
                       preferred_element_type=F32) + bv[h]
        s = jnp.einsum("mnd,mkd->mnk", q, k,
                       preferred_element_type=F32) * scale + bias
        s = s - jnp.max(s, axis=-1, keepdims=True)
        p = jnp.exp(s)
        p = p / jnp.sum(p, axis=-1, keepdims=True)
        o = jnp.einsum("mnk,mkd->mnd", p, v, preferred_element_type=F32)
        c = jnp.einsum("mnd,de->mne", o, wo[h], preferred_element_type=F32)
        out = c if out is None else out + c
    return out + bo


# ----------------------------------------------------------------------------
# Small fused 2-D kernels
# ----------------------------------------------------------------------------
def norm_linear(x, g, w, b):
    """rows x features: RMSNorm -> Linear."""
    def kernel(x_ref, g_ref, w_ref, b_ref, o_ref):
        xn = _rms_val(x_ref[...].astype(F32), g_ref[...])
        y = jnp.dot(xn, w_ref[...], preferred_element_type=F32) + b_ref[...]
        o_ref[...] = y.astype(o_ref.dtype)

    return pl.pallas_call(
        kernel,
        out_shape=jax.ShapeDtypeStruct((x.shape[0], w.shape[1]), x.dtype),
        in_specs=[_vspec()] * 4,
        out_specs=_vspec(),
    )(x, g, w, b)


def linear_norm(x, w, b, g):
    """rows x features: Linear -> RMSNorm (init_jvel tail)."""
    def kernel(x_ref, w_ref, b_ref, g_ref, o_ref):
        y = jnp.dot(x_ref[...].astype(F32), w_ref[...],
                    preferred_element_type=F32) + b_ref[...]
        o_ref[...] = _rms_val(y, g_ref[...]).astype(o_ref.dtype)

    return pl.pallas_call(
        kernel,
        out_shape=jax.ShapeDtypeStruct((x.shape[0], w.shape[1]), x.dtype),
        in_specs=[_vspec()] * 4,
        out_specs=_vspec(),
    )(x, w, b, g)


def mlp2d(x, w1, b1, w2, b2):
    """rows x features: Linear -> SiLU -> Linear (token-mixing MLP)."""
    def kernel(x_ref, w1_ref, b1_ref, w2_ref, b2_ref, o_ref):
        h = jnp.dot(x_ref[...].astype(F32), w1_ref[...],
                    preferred_element_type=F32) + b1_ref[...]
        h = h * jax.nn.sigmoid(h)
        y = jnp.dot(h, w2_ref[...], preferred_element_type=F32) + b2_ref[...]
        o_ref[...] = y.astype(o_ref.dtype)

    return pl.pallas_call(
        kernel,
        out_shape=jax.ShapeDtypeStruct((x.shape[0], w2.shape[1]), x.dtype),
        in_specs=[_vspec()] * 5,
        out_specs=_vspec(),
    )(x, w1, b1, w2, b2)


# ----------------------------------------------------------------------------
# IMU embedding (+positional embedding) in one kernel
# ----------------------------------------------------------------------------
def imu_embed(x, p, pos):
    """(M, NI, 12): RMSNorm -> Linear(12->E) -> + positional embedding."""
    M_, NI_, _ = x.shape
    E_ = p["w"].shape[1]

    def kernel(x_ref, g_ref, w_ref, b_ref, pos_ref, o_ref):
        xn = _rms_val(x_ref[...].astype(F32), g_ref[...])
        y = (jnp.einsum("mni,ie->mne", xn, w_ref[...],
                        preferred_element_type=F32)
             + b_ref[...] + pos_ref[...])
        o_ref[...] = y.astype(o_ref.dtype)

    return pl.pallas_call(
        kernel,
        out_shape=jax.ShapeDtypeStruct((M_, NI_, E_), x.dtype),
        in_specs=[_vspec()] * 5,
        out_specs=_vspec(),
    )(x, p["g"], p["w"], p["b"], pos)


# ----------------------------------------------------------------------------
# Transformer encoder block (adjacency-biased self-attention + MLP)
# ----------------------------------------------------------------------------
def transformer_block(x, p, bias, n_head):
    M, N, E = x.shape
    tm = _pick_tm(M)

    def kernel(x_ref, b_ref, g1, wq, bq, wk, bk, wv, bv, wo, bo,
               g2, w1, b1, w2, b2, o_ref):
        xv = x_ref[...].astype(F32)
        xn = _rms_val(xv, g1[...])
        xv = xv + _mha(xn, xn, wq[...], bq[...], wk[...], bk[...],
                       wv[...], bv[...], wo[...], bo[...], b_ref[...], n_head)
        xv = xv + _mlp_val(xv, g2[...], w1[...], b1[...], w2[...], b2[...])
        o_ref[...] = xv.astype(o_ref.dtype)

    args = (x, bias, p["g1"], p["wq"], p["bq"], p["wk"], p["bk"], p["wv"],
            p["bv"], p["wo"], p["bo"], p["g2"], p["w1"], p["b1"], p["w2"],
            p["b2"])
    in_specs = ([pl.BlockSpec((tm, N, E), lambda i: (i, 0, 0))]
                + [_full_spec(a) for a in args[1:]])
    return pl.pallas_call(
        kernel,
        out_shape=jax.ShapeDtypeStruct((M, N, E), x.dtype),
        grid=(M // tm,),
        in_specs=in_specs,
        out_specs=pl.BlockSpec((tm, N, E), lambda i: (i, 0, 0)),
        compiler_params=pltpu.CompilerParams(dimension_semantics=("parallel",)),
    )(*args)


# ----------------------------------------------------------------------------
# Transformer decoder block (masked self-attn + cross-attn joints->imus + MLP)
# ----------------------------------------------------------------------------
def transformer_decoder_block(q, kv, p, bias_q, bias_qk, n_head):
    M, Nq, E = q.shape
    Nk = kv.shape[1]
    tm = _pick_tm(M)

    def kernel(q_ref, kv_ref, bq_ref, bqk_ref,
               g1, wq1, bq1, wk1, bk1, wv1, bv1, wo1, bo1,
               g2, wq2, bq2, wk2, bk2, wv2, bv2, wo2, bo2,
               g3, w1, b1, w2, b2, o_ref):
        qv = q_ref[...].astype(F32)
        kvv = kv_ref[...].astype(F32)
        # masked self attention
        qn = _rms_val(qv, g1[...])
        qv = qv + _mha(qn, qn, wq1[...], bq1[...], wk1[...], bk1[...],
                       wv1[...], bv1[...], wo1[...], bo1[...],
                       bq_ref[...], n_head)
        # cross attention (query joints -> imu memory tokens)
        # TODO(synk): K/V use the raw memory tokens (decoder definition
        #   unavailable); only the query side is pre-normalized.
        qn = _rms_val(qv, g2[...])
        qv = qv + _mha(qn, kvv, wq2[...], bq2[...], wk2[...], bk2[...],
                       wv2[...], bv2[...], wo2[...], bo2[...],
                       bqk_ref[...], n_head)
        # MLP
        qv = qv + _mlp_val(qv, g3[...], w1[...], b1[...], w2[...], b2[...])
        o_ref[...] = qv.astype(o_ref.dtype)

    args = (q, kv, bias_q, bias_qk,
            p["g1"], p["wq1"], p["bq1"], p["wk1"], p["bk1"], p["wv1"],
            p["bv1"], p["wo1"], p["bo1"],
            p["g2"], p["wq2"], p["bq2"], p["wk2"], p["bk2"], p["wv2"],
            p["bv2"], p["wo2"], p["bo2"],
            p["g3"], p["w1"], p["b1"], p["w2"], p["b2"])
    in_specs = ([pl.BlockSpec((tm, Nq, E), lambda i: (i, 0, 0)),
                 pl.BlockSpec((tm, Nk, E), lambda i: (i, 0, 0))]
                + [_full_spec(a) for a in args[2:]])
    q_out = pl.pallas_call(
        kernel,
        out_shape=jax.ShapeDtypeStruct((M, Nq, E), q.dtype),
        grid=(M // tm,),
        in_specs=in_specs,
        out_specs=pl.BlockSpec((tm, Nq, E), lambda i: (i, 0, 0)),
        compiler_params=pltpu.CompilerParams(dimension_semantics=("parallel",)),
    )(*args)
    return q_out, kv


# ----------------------------------------------------------------------------
# ConvLSTMBlock: causal Conv1d over time + SiLU + multi-layer LSTM (one kernel)
# Input is time-major (T, Bn, E); h0/c0: (n_layer, Bn, E).
# ----------------------------------------------------------------------------
def conv_lstm_block(x_tm, p, h0, c0, kernel_size):
    T, Bn, E = x_tm.shape
    n_layer = int(p["wih"].shape[0])
    K = kernel_size

    def kernel(x_ref, wc_ref, bc_ref, wih_ref, whh_ref, bl_ref, h0_ref, c0_ref,
               o_ref, cur_ref, gi_ref, gf_ref, gg_ref, go_ref):
        xv = x_ref[...].astype(F32)                                   # (T,Bn,E)
        # ---- causal conv over time: per-tap matmuls, accumulate ----
        xp = jnp.concatenate([jnp.zeros((K - 1, Bn, E), F32), xv], axis=0)
        acc = None
        for j in range(K):
            term = jnp.einsum("tbe,ef->tbf", xp[j:j + T], wc_ref[j],
                              preferred_element_type=F32)
            acc = term if acc is None else acc + term
        acc = acc + bc_ref[...]
        acc = acc * jax.nn.sigmoid(acc)                               # SiLU
        cur_ref[...] = acc

        gate_refs = (gi_ref, gf_ref, gg_ref, go_ref)
        for l in range(n_layer):
            # hoist x @ Wih (+bias) for ALL timesteps out of the recurrence
            cur = cur_ref[...]
            for g in range(4):
                gate_refs[g][...] = (jnp.einsum("tbe,ef->tbf", cur,
                                                wih_ref[l, g],
                                                preferred_element_type=F32)
                                     + bl_ref[l, g])
            wi, wf, wg, wo_ = (whh_ref[l, 0], whh_ref[l, 1],
                               whh_ref[l, 2], whh_ref[l, 3])

            def body(t, carry, wi=wi, wf=wf, wg=wg, wo_=wo_):
                h, c = carry
                i_g = jax.nn.sigmoid(
                    gi_ref[t] + jnp.dot(h, wi, preferred_element_type=F32))
                f_g = jax.nn.sigmoid(
                    gf_ref[t] + jnp.dot(h, wf, preferred_element_type=F32))
                g_g = jnp.tanh(
                    gg_ref[t] + jnp.dot(h, wg, preferred_element_type=F32))
                o_g = jax.nn.sigmoid(
                    go_ref[t] + jnp.dot(h, wo_, preferred_element_type=F32))
                c = f_g * c + i_g * g_g
                h = o_g * jnp.tanh(c)
                cur_ref[t] = h          # overwrite input slot (no longer needed)
                return (h, c)

            lax.fori_loop(0, T, body,
                          (h0_ref[l].astype(F32), c0_ref[l].astype(F32)),
                          unroll=T <= 16)

        o_ref[...] = cur_ref[...].astype(o_ref.dtype)

    return pl.pallas_call(
        kernel,
        out_shape=jax.ShapeDtypeStruct((T, Bn, E), x_tm.dtype),
        in_specs=[_vspec()] * 8,
        out_specs=_vspec(),
        scratch_shapes=[pltpu.VMEM((T, Bn, E), F32)] * 5,
    )(x_tm, p["wc"], p["bc"], p["wih"], p["whh"], p["bl"], h0, c0)


# ----------------------------------------------------------------------------
# Fused "middle" kernel: imus_velocity head + cat_layer + mixer token pre-norm
# ----------------------------------------------------------------------------
def fused_cat_imuv(x, y, p_vel, p_cat, g_tok):
    M_, NI_, E_ = x.shape

    def kernel(x_ref, y_ref, gv, wv, bv, gc, wc, bc, gt,
               v_ref, o_ref, yn_ref):
        xv = x_ref[...].astype(F32)
        yv = y_ref[...].astype(F32)
        v = jnp.einsum("mne,ef->mnf", _rms_val(yv, gv[...]), wv[...],
                       preferred_element_type=F32) + bv[...]
        v_ref[...] = v.astype(v_ref.dtype)
        cat = jnp.concatenate([xv, yv], axis=-1)
        xc = jnp.einsum("mne,ef->mnf", _rms_val(cat, gc[...]), wc[...],
                        preferred_element_type=F32) + bc[...]
        o_ref[...] = xc.astype(o_ref.dtype)
        yn_ref[...] = _rms_val(yv, gt[...]).astype(yn_ref.dtype)

    return pl.pallas_call(
        kernel,
        out_shape=(jax.ShapeDtypeStruct((M_, NI_, 3), x.dtype),
                   jax.ShapeDtypeStruct((M_, NI_, E_), x.dtype),
                   jax.ShapeDtypeStruct((M_, NI_, E_), x.dtype)),
        in_specs=[_vspec()] * 9,
        out_specs=(_vspec(), _vspec(), _vspec()),
    )(x, y, p_vel["g"], p_vel["w"], p_vel["b"],
      p_cat["g"], p_cat["w"], p_cat["b"], g_tok)


# ----------------------------------------------------------------------------
# Mixer (token mixing + channel MLP)
# ----------------------------------------------------------------------------
def token_mix(y, p):
    """Token-mixing MLP along the token axis (transpose kept in XLA glue)."""
    M_, Nin, E_ = y.shape
    yt = jnp.swapaxes(y, 1, 2).reshape(M_ * E_, Nin)
    z = mlp2d(yt, p["wt1"], p["bt1"], p["wt2"], p["bt2"])
    Nout = p["wt2"].shape[1]
    return jnp.swapaxes(z.reshape(M_, E_, Nout), 1, 2)


def mixer_tail(z, p, g_next=None, pos=None):
    """Channel MLP of a MixerBlock: out = z + MLP(RMSNorm(z)) (+pos) (-> RMSNorm)."""
    has_next = g_next is not None
    has_pos = pos is not None

    def kernel(*refs):
        z_ref, g_ch, wc1, bc1, wc2, bc2 = refs[:6]
        i = 6
        gn = refs[i] if has_next else None
        i += int(has_next)
        ps = refs[i] if has_pos else None
        i += int(has_pos)
        o_ref = refs[i]
        zv = z_ref[...].astype(F32)
        u = jnp.einsum("mne,ef->mnf", _rms_val(zv, g_ch[...]), wc1[...],
                       preferred_element_type=F32) + bc1[...]
        u = u * jax.nn.sigmoid(u)
        w = jnp.einsum("mnf,fe->mne", u, wc2[...],
                       preferred_element_type=F32) + bc2[...]
        out = zv + w
        if has_pos:
            out = out + ps[...]
        if has_next:
            out = _rms_val(out, gn[...])
        o_ref[...] = out.astype(o_ref.dtype)

    args = [z, p["g_ch"], p["wc1"], p["bc1"], p["wc2"], p["bc2"]]
    if has_next:
        args.append(g_next)
    if has_pos:
        args.append(pos)
    return pl.pallas_call(
        kernel,
        out_shape=jax.ShapeDtypeStruct(z.shape, z.dtype),
        in_specs=[_vspec()] * len(args),
        out_specs=_vspec(),
    )(*args)


# ----------------------------------------------------------------------------
# Initial LSTM states
# ----------------------------------------------------------------------------
def init_jvel_state(last_jvel, p, B, L, E):
    C = 2 * L * E

    def j1_kernel(x_ref, g0, w1, b1, o_ref):
        h = _rms_val(x_ref[...].astype(F32), g0[...])
        o_ref[...] = (jnp.einsum("bnd,df->bnf", h, w1[...],
                                 preferred_element_type=F32) + b1[...]
                      ).astype(o_ref.dtype)

    h = pl.pallas_call(
        j1_kernel,
        out_shape=jax.ShapeDtypeStruct((B, 24, C), F32),
        in_specs=[_vspec()] * 4,
        out_specs=_vspec(),
    )(last_jvel, p["g0"], p["w1"], p["b1"])

    # token mixing 24 -> 6 (kernel kept 2-D; transpose done by XLA glue)
    ht = jnp.swapaxes(h, 1, 2).reshape(B * C, 24)
    ht = mlp2d(ht, p["mwt1"], p["mbt1"], p["mwt2"], p["mbt2"])       # (B*C, 6)
    h = jnp.swapaxes(ht.reshape(B, C, 6), 1, 2).reshape(B * 6, C)

    h = linear_norm(h, p["w2"], p["b2"], p["g1"])                    # (B*6, 2LE)
    h = h.reshape(B * 6, 2, L, E).transpose(1, 2, 0, 3)              # (2,L,B*6,E)
    return h[0], h[1]


def init_tran_state(last_tran, p, B, E):
    def kernel(x_ref, g0, w1, b1, w2, b2, g1, o_ref):
        h = _rms_val(x_ref[...].astype(F32), g0[...])
        h = jnp.dot(h, w1[...], preferred_element_type=F32) + b1[...]
        h = h * jax.nn.sigmoid(h)
        h = jnp.dot(h, w2[...], preferred_element_type=F32) + b2[...]
        h = _rms_val(h, g1[...])
        o_ref[...] = h.astype(o_ref.dtype)

    h = pl.pallas_call(
        kernel,
        out_shape=jax.ShapeDtypeStruct((B, 2 * E), F32),
        in_specs=[_vspec()] * 7,
        out_specs=_vspec(),
    )(last_tran, p["g0"], p["w1"], p["b1"], p["w2"], p["b2"], p["g1"])
    h = h.reshape(B, 2, 1, E).transpose(1, 2, 0, 3)                  # (2,1,B,E)
    return h[0], h[1]


# ----------------------------------------------------------------------------
# STIPoser forward
# ----------------------------------------------------------------------------
def stiposer_forward(params, datas):
    imu_acc = datas["imu_acc"].astype(F32)
    imu_ori = datas["imu_ori"].astype(F32)
    last_jvel = datas["last_jvel"].astype(F32)
    last_tran = datas["last_trans"].astype(F32)
    B, T, NI, _ = imu_acc.shape
    cfg = params["cfg"]
    E, L, H, K, NJ = (cfg["embed_dim"], cfg["n_lstm_layer"], cfg["n_head"],
                      cfg["kernel_size"], cfg["n_reduced"])
    M = B * T

    # --- IMU pre-processing (tiny glue, plain JAX) ---
    acc = jnp.concatenate(
        [imu_acc[:, :, :1], imu_acc[:, :, 1:] - imu_acc[:, :, :1]], axis=2)
    acc = jnp.einsum("btni,btij->btnj", acc, imu_ori[:, :, 0])
    r0t = jnp.swapaxes(imu_ori[:, :, :1], -1, -2)
    ori = jnp.concatenate(
        [imu_ori[:, :, :1], jnp.matmul(r0t, imu_ori[:, :, 1:])], axis=2)
    x12 = jnp.concatenate([acc, ori.reshape(B, T, NI, 9)], axis=-1)  # (B,T,6,12)

    # --- LSTM initial states ---
    hs0, cs0 = init_jvel_state(last_jvel, params["init_jvel"], B, L, E)
    hs1, cs1 = init_tran_state(last_tran, params["init_tran"], B, E)

    # --- IMU embedding + positional embedding (one kernel) ---
    x = imu_embed(x12.reshape(M, NI, 12), params["imu_emb"],
                  params["imu_pos_emb"])

    # --- IMU spatial transformer blocks ---
    y = x
    for blk in params["imu_spatial"]:
        y = transformer_block(y, blk, params["bias_imu"], H)

    # --- IMU temporal ConvLSTM (time-major slab; cheap XLA transposes) ---
    y_tm = y.reshape(B, T, NI, E).transpose(1, 0, 2, 3).reshape(T, B * NI, E)
    y_tm = conv_lstm_block(y_tm, params["imu_temporal"], hs0, cs0, K)
    y = y_tm.reshape(T, B, NI, E).transpose(1, 0, 2, 3).reshape(M, NI, E)

    outputs = {}
    # --- fused: imus_velocity head + cat_layer + mixer token pre-norm ---
    v, xcat, yn1 = fused_cat_imuv(x, y, params["imuv_head"],
                                  params["cat_layer"],
                                  params["mixer"][0]["g_tok"])
    outputs["imus_velocity"] = v.reshape(B, T, NI, 3)

    # --- mixer: 6 imu tokens -> 24 -> 11 joint tokens ---
    z1 = token_mix(yn1, params["mixer"][0])
    yn2 = mixer_tail(z1, params["mixer"][0],
                     g_next=params["mixer"][1]["g_tok"])
    z2 = token_mix(yn2, params["mixer"][1])
    q = mixer_tail(z2, params["mixer"][1], pos=params["joint_pos_emb"])

    # --- joint spatial decoder blocks ---
    for blk in params["joint_spatial"]:
        q, xcat = transformer_decoder_block(q, xcat, blk, params["bias_joint"],
                                            params["bias_imu2joint"], H)

    t = q[:, 0]                                                      # (M, E)
    xj = q[:, 1:]                                                    # (M, NJ-1, E)

    t_tm = t.reshape(B, T, E).transpose(1, 0, 2)                     # (T, B, E)
    t_tm = conv_lstm_block(t_tm, params["trn_temporal"], hs1, cs1, K)
    t2d = t_tm.transpose(1, 0, 2).reshape(M, E)

    rot = norm_linear(xj.reshape(M * (NJ - 1), E), params["pose_head"]["g"],
                      params["pose_head"]["w"], params["pose_head"]["b"])
    outputs["out_rot"] = rot.reshape(B, T, NJ - 1, 6)
    trn = norm_linear(t2d, params["tran_head"]["g"],
                      params["tran_head"]["w"], params["tran_head"]["b"])
    outputs["out_trn"] = trn.reshape(B, T, 3)
    return outputs


# ----------------------------------------------------------------------------
# Deterministic parameter initialization
# ----------------------------------------------------------------------------
def init_params(key, E=32, L=2, coef=2, K=3, H=4, NI=6, NJ=11):
    keys = iter(jax.random.split(key, 512))

    def nrm(shape, scale=0.05):
        return jax.random.normal(next(keys), shape, F32) * scale

    def zb(d):
        return jnp.zeros((1, d), F32)

    def gone(d):
        return jnp.ones((1, d), F32)

    dh = E // H

    def attn_blk():
        return dict(g1=gone(E),
                    wq=nrm((H, E, dh)), bq=jnp.zeros((H, 1, dh), F32),
                    wk=nrm((H, E, dh)), bk=jnp.zeros((H, 1, dh), F32),
                    wv=nrm((H, E, dh)), bv=jnp.zeros((H, 1, dh), F32),
                    wo=nrm((H, dh, E)), bo=zb(E),
                    g2=gone(E), w1=nrm((E, coef * E)), b1=zb(coef * E),
                    w2=nrm((coef * E, E)), b2=zb(E))

    def dec_blk():
        d = dict(g1=gone(E), g2=gone(E), g3=gone(E),
                 w1=nrm((E, coef * E)), b1=zb(coef * E),
                 w2=nrm((coef * E, E)), b2=zb(E))
        for s in ("1", "2"):
            d.update({
                "wq" + s: nrm((H, E, dh)), "bq" + s: jnp.zeros((H, 1, dh), F32),
                "wk" + s: nrm((H, E, dh)), "bk" + s: jnp.zeros((H, 1, dh), F32),
                "wv" + s: nrm((H, E, dh)), "bv" + s: jnp.zeros((H, 1, dh), F32),
                "wo" + s: nrm((H, dh, E)), "bo" + s: zb(E)})
        return d

    def conv_lstm(n_layer):
        # NOTE: wc[j] corresponds to torch Conv1d weight[:, :, j].T with causal
        # left padding; wih/whh are the torch LSTM weights split per gate
        # (i, f, g, o); bl is the pre-summed bias_ih + bias_hh per gate.
        return dict(wc=nrm((K, E, E)), bc=zb(E),
                    wih=nrm((n_layer, 4, E, E)), whh=nrm((n_layer, 4, E, E)),
                    bl=jnp.zeros((n_layer, 4, 1, E), F32))

    def mixer_blk(d_in, d_out):
        return dict(g_tok=gone(E), wt1=nrm((d_in, coef * d_in)),
                    bt1=zb(coef * d_in), wt2=nrm((coef * d_in, d_out)),
                    bt2=zb(d_out), g_ch=gone(E), wc1=nrm((E, coef * E)),
                    bc1=zb(coef * E), wc2=nrm((coef * E, E)), bc2=zb(E))

    # TODO(synk): adjacency matrices synthesized (star graphs) in lieu of adj_matrix.pt
    adj_imu = jnp.eye(NI, dtype=F32).at[0, :].set(1.0).at[:, 0].set(1.0)
    adj_joint = jnp.eye(NJ, dtype=F32).at[0, :].set(1.0).at[:, 0].set(1.0)
    adj_imu2joint = jnp.ones((NJ, NI), F32)
    to_bias = lambda a: jnp.where(a > 0, 0.0, -1e9).astype(F32)

    return dict(
        cfg=dict(embed_dim=E, n_lstm_layer=L, mlp_coef=coef, kernel_size=K,
                 n_head=H, n_reduced=NJ),
        imu_pos_emb=nrm((1, NI, E), scale=math.sqrt(2.0 / (NI + E))),
        joint_pos_emb=nrm((1, NJ, E), scale=math.sqrt(2.0 / (NJ + E))),
        bias_imu=to_bias(adj_imu),
        bias_joint=to_bias(adj_joint),
        bias_imu2joint=to_bias(adj_imu2joint),
        imu_emb=dict(g=gone(12), w=nrm((12, E)), b=zb(E)),
        cat_layer=dict(g=gone(2 * E), w=nrm((2 * E, E)), b=zb(E)),
        pose_head=dict(g=gone(E), w=nrm((E, 6)), b=zb(6)),
        tran_head=dict(g=gone(E), w=nrm((E, 3)), b=zb(3)),
        imuv_head=dict(g=gone(E), w=nrm((E, 3)), b=zb(3)),
        init_jvel=dict(g0=gone(3), w1=nrm((3, 2 * L * E)), b1=zb(2 * L * E),
                       mwt1=nrm((24, coef * 24)), mbt1=zb(coef * 24),
                       mwt2=nrm((coef * 24, 6)), mbt2=zb(6),
                       w2=nrm((2 * L * E, 2 * L * E)), b2=zb(2 * L * E),
                       g1=gone(2 * L * E)),
        init_tran=dict(g0=gone(3), w1=nrm((3, 4 * E)), b1=zb(4 * E),
                       w2=nrm((4 * E, 2 * E)), b2=zb(2 * E), g1=gone(2 * E)),
        imu_spatial=[attn_blk() for _ in range(4)],
        joint_spatial=[dec_blk() for _ in range(2)],
        mixer=[mixer_blk(NI, 24), mixer_blk(24, NJ)],
        imu_temporal=conv_lstm(L),
        trn_temporal=conv_lstm(1),
    )


if __name__ == "__main__":
    key = jax.random.PRNGKey(0)
    kp, k1, k2, k3, k4 = jax.random.split(key, 5)
    B, T, NI = 2, 8, 6

    params = init_params(kp)
    imu_acc = jax.random.normal(k1, (B, T, NI, 3), F32)
    imu_ori = (jax.random.normal(k2, (B, T, NI, 3, 3), F32) * 0.3
               + jnp.eye(3, dtype=F32))
    last_jvel = jax.random.normal(k3, (B, 24, 3), F32)
    last_trans = jax.random.normal(k4, (B, 3), F32)
    datas = dict(imu_acc=imu_acc, imu_ori=imu_ori,
                 last_jvel=last_jvel, last_trans=last_trans)

    out = stiposer_forward(params, datas)
    jax.block_until_ready(out)

    assert out["imus_velocity"].shape == (B, T, NI, 3)
    assert out["out_rot"].shape == (B, T, 10, 6)
    assert out["out_trn"].shape == (B, T, 3)
    print("KERNEL_OK")
</pallas_src>

<mosaic_0001>
module attributes {stable_mosaic.version = 11 : i64} {
  func.func @j1_kernel(%arg0: memref<2x24x3xf32, #tpu.memory_space<vmem>>, %arg1: memref<1x3xf32, #tpu.memory_space<vmem>>, %arg2: memref<3x128xf32, #tpu.memory_space<vmem>>, %arg3: memref<1x128xf32, #tpu.memory_space<vmem>>, %arg4: memref<2x24x128xf32, #tpu.memory_space<vmem>>) attributes {dimension_semantics = [], scalar_prefetch = 0 : i64, scratch_operands = 0 : i64, tpu.core_type = #tpu.core_type<tc>} {
    %c0 = arith.constant 0 : index
    %c0_0 = arith.constant 0 : index
    %c0_1 = arith.constant 0 : index
    %0 = vector.load %arg0[%c0, %c0_0, %c0_1] : memref<2x24x3xf32, #tpu.memory_space<vmem>>, vector<2x24x3xf32>
    %c0_2 = arith.constant 0 : index
    %c0_3 = arith.constant 0 : index
    %1 = vector.load %arg1[%c0_2, %c0_3] : memref<1x3xf32, #tpu.memory_space<vmem>>, vector<1x3xf32>
    %2 = arith.mulf %0, %0 : vector<2x24x3xf32>
    %cst = arith.constant dense<0.000000e+00> : vector<2x24xf32>
    %3 = vector.multi_reduction <add>, %2, %cst [2] : vector<2x24x3xf32> to vector<2x24xf32>
    %4 = vector.shape_cast %3 : vector<2x24xf32> to vector<2x24x1xf32>
    %cst_4 = arith.constant 3.000000e+00 : f32
    %5 = vector.broadcast %cst_4 : f32 to vector<2x24x1xf32>
    %6 = arith.divf %4, %5 : vector<2x24x1xf32>
    %cst_5 = arith.constant 9.99999997E-7 : f32
    %7 = vector.broadcast %cst_5 : f32 to vector<2x24x1xf32>
    %8 = arith.addf %6, %7 : vector<2x24x1xf32>
    %9 = math.rsqrt %8 : vector<2x24x1xf32>
    %10 = vector.broadcast %9 : vector<2x24x1xf32> to vector<2x24x3xf32>
    %11 = arith.mulf %0, %10 : vector<2x24x3xf32>
    %12 = vector.shape_cast %1 : vector<1x3xf32> to vector<1x1x3xf32>
    %13 = vector.broadcast %12 : vector<1x1x3xf32> to vector<2x24x3xf32>
    %14 = arith.mulf %11, %13 : vector<2x24x3xf32>
    %c0_6 = arith.constant 0 : index
    %c0_7 = arith.constant 0 : index
    %15 = vector.load %arg2[%c0_6, %c0_7] : memref<3x128xf32, #tpu.memory_space<vmem>>, vector<3x128xf32>
    "tpu.trace_start"() <{level = 10 : i32, message = "bnd,df->bnf"}> : () -> ()
    %cst_8 = arith.constant dense<0.000000e+00> : vector<2x24x128xf32>
    %16 = tpu.matmul %14, %15, %cst_8 {dimension_numbers = #tpu.dot_dimension_numbers<[2], [0], [0, 1], [1], [0, 0, 0, 1, 1, 1], [], []>} : vector<2x24x3xf32>, vector<3x128xf32>, vector<2x24x128xf32> -> vector<2x24x128xf32>
    "tpu.trace_stop"() : () -> ()
    %c0_9 = arith.constant 0 : index
    %c0_10 = arith.constant 0 : index
    %17 = vector.load %arg3[%c0_9, %c0_10] : memref<1x128xf32, #tpu.memory_space<vmem>>, vector<1x128xf32>
    %18 = vector.shape_cast %17 : vector<1x128xf32> to vector<1x1x128xf32>
    %19 = vector.broadcast %18 : vector<1x1x128xf32> to vector<2x24x128xf32>
    %20 = arith.addf %16, %19 : vector<2x24x128xf32>
    %c0_11 = arith.constant 0 : index
    %c0_12 = arith.constant 0 : index
    %c0_13 = arith.constant 0 : index
    %21 = vector.load %arg4[%c0_11, %c0_12, %c0_13] : memref<2x24x128xf32, #tpu.memory_space<vmem>>, vector<2x24x128xf32>
    tpu.vector_store %arg4[%c0_11, %c0_12, %c0_13], %20 {strides = array<i32>} : memref<2x24x128xf32, #tpu.memory_space<vmem>>, vector<2x24x128xf32>,
    return
  }
}

</mosaic_0001>

<bundles_post_ra>
// kernel: tpu_custom_call.1
= control target key start
LH: loop header
LB: loop body
LE: loop exit
PB: predicated region body
PF: predicated region fallthrough
CT: control target
= control target key end

     0   :  { %vm31_vm0 = vcmask 23552   ;;  %s396_s0 = inlined_call_operand.vmem [shape: f32[2,24,3], index: 0, kind: input, shape index: {}]   ;;  %s397_s1 = inlined_call_operand.vmem [shape: f32[1,3], index: 1, kind: input, shape index: {}]   ;;  %s398_s2 = inlined_call_operand.vmem [shape: f32[3,128], index: 2, kind: input, shape index: {}]   ;;  %s399_s3 = inlined_call_operand.vmem [shape: f32[1,128], index: 3, kind: input, shape index: {}]   ;;  %s400_s4 = inlined_call_operand.hbm [shape: f32[2,24,128], index: 4, kind: output, shape index: {}]  }
   0x1   :  { %v20_v0 = vld [vmem:[%s396_s0 + $0x10] sm:$0xff]  ;;  %v18_v1 = vld [vmem:[%s396_s0] sm:$0xff]  ;;  %v339_v2 = vld [vmem:[%s396_s0 + $0x18] sm:$0xff] }
   0x2   :  { %v27_v3 = vmul.f32 %v20_v0, %v20_v0  ;;  %v25_v4 = vmul.f32 %v18_v1, %v18_v1  ;;  %v28_v5 = vmul.f32 %v339_v2, %v339_v2  ;;  %v22_v6 = vld [vmem:[%s396_s0 + $0x20] sm:$0xff]  ;;  %v349_v8 = vld [vmem:[%s396_s0 + $0x8] sm:$0xff] }
   0x3   :  { %v29_v7 = vmul.f32 %v22_v6, %v22_v6  ;;  %v354_v9 = vld [vmem:[%s396_s0 + $0x28] sm:$0xff] }
   0x4   :  { %9 = vsyncpa [#allocation3], 0  ;;  %v38_v10 = vsel %vm31_vm0, %v27_v3, 0.0  ;;  %v32_v11 = vsel %vm31_vm0, %v25_v4, 0.0  ;;  %v41_v12 = vsel %vm31_vm0, %v28_v5, 0.0  ;;  %v26_v14 = vmul.f32 %v349_v8, %v349_v8  ;;  %s302_s30 = smov [#allocation2]  }
   0x5   :  { %39 = vadd.xlane.f32.xlu0 %v38_v10  ;;  %33 = vadd.xlane.f32.xlu1 %v32_v11  ;;  %v44_v13 = vsel %vm31_vm0, %v29_v7, 0.0  ;;  %v30_v15 = vmul.f32 %v354_v9, %v354_v9  ;;  %v87_v18 = vld [vmem:[%s398_s2] sm:$0x7]  ;;  %vm113_vm1 = vcmask 1042432   ;;  %s223_s5 = sshll.u32 %s302_s30, 4  ;;  %s224_s5 = int_to_ptr.vmem [resolvable:$true] %s223_s5 }
   0x6   :  { %v35_v16 = vsel %vm31_vm0, %v26_v14, 0.0  ;;  %261 = vmatprep.subr.msk.mxu1 %vm113_vm1, %v87_v18  ;;  %250 = vmatprep.subr.msk.mxu0 %vm113_vm1, %v87_v18  ;;  %v234_v38 = vld [vmem:[%s397_s1] ss:$0 sm:$0xff]  ;;  %p283_p1 = scmp.lt.s32.totalorder %s224_s5, %s224_s5 }
   0x7   :  { %v47_v17 = vsel %vm31_vm0, %v30_v15, 0.0  ;;  %262 = vmatpush3.msk.msra.mxu1 %vm113_vm1, %v87_v18  ;;  %251 = vmatpush3.msk.msra.mxu0 %vm113_vm1, %v87_v18  ;;  %v235_v56 = vld [vmem:[%s399_s3] ss:$0 sm:$0xff]  ;;  %s278_s3 = scalar_lea.vmem %s224_s5, 768 }
   0x8   :  { %p279_p0 = scmp.ne.s32.totalorder %s224_s5, %s278_s3  ;;  %p284_p2 = scmp.lt.s32.totalorder %s278_s3, %s278_s3 }
   0x9   :  { %42 = vadd.xlane.f32.xlu0 %v41_v12  ;;  %45 = vadd.xlane.f32.xlu1 %v44_v13 }
   0xa   :  { %p285_p3 = por %p284_p2, %p283_p1 }
   0xc   :  { %p286_p4 = pnand %p285_p3, %p279_p0 }
   0xd   :  { %36 = vadd.xlane.f32.xlu0 %v35_v16  ;;  %48 = vadd.xlane.f32.xlu1 %v47_v17 }
  0x92   :  { %v40_v19 = vpop.xlane.xlu0 %39  ;;  %v34_v20 = vpop.xlane.xlu1 %33 }
  0x93   :  { %v53_v21 = vmul.f32 0.33333334, %v40_v19  ;;  %v51_v22 = vmul.f32 0.33333334, %v34_v20 }
  0x95   :  { %v59_v23 = vadd.f32 1e-06, %v53_v21  ;;  %v57_v24 = vadd.f32 1e-06, %v51_v22 }
  0x96   :  { %v43_v25 = vpop.xlane.xlu0 %42  ;;  %v46_v26 = vpop.xlane.xlu1 %45 }
  0x97   :  { %266 = vrsqrt.f32 %v59_v23  ;;  %v54_v27 = vmul.f32 0.33333334, %v43_v25  ;;  %v55_v28 = vmul.f32 0.33333334, %v46_v26 }
  0x98   :  { %268 = vrsqrt.f32 %v57_v24 }
  0x99   :  { %v60_v29 = vadd.f32 1e-06, %v54_v27  ;;  %v61_v30 = vadd.f32 1e-06, %v55_v28 }
  0x9a   :  { %v37_v31 = vpop.xlane.xlu0 %36  ;;  %v49_v32 = vpop.xlane.xlu1 %48 }
  0x9b   :  { %270 = vrsqrt.f32 %v60_v29  ;;  %v52_v33 = vmul.f32 0.33333334, %v37_v31  ;;  %v56_v34 = vmul.f32 0.33333334, %v49_v32 }
  0x9c   :  { %272 = vrsqrt.f32 %v61_v30 }
  0x9d   :  { %v58_v35 = vadd.f32 1e-06, %v52_v33  ;;  %v62_v36 = vadd.f32 1e-06, %v56_v34 }
  0x9f   :  { %274 = vrsqrt.f32 %v58_v35 }
  0xa0   :  { %276 = vrsqrt.f32 %v62_v36 }
  0xa1   :  { %v267_v37 = vpop.eup %266 }
  0xa2   :  { %v269_v39 = vpop.eup %268  ;;  %v71_v40 = vmul.f32 %v267_v37, %v20_v0 }
  0xa3   :  { %v69_v41 = vmul.f32 %v269_v39, %v18_v1 }
  0xa4   :  { %v83_v42 = vmul.f32 %v234_v38, %v71_v40 }
  0xa5   :  { %v271_v43 = vpop.eup %270  ;;  %v81_v44 = vmul.f32 %v234_v38, %v69_v41 }
  0xa6   :  { %v273_v45 = vpop.eup %272  ;;  %255 = vmatprep.mubr.msk.f32.mxu1 %vm31_vm0, %v83_v42  ;;  %v72_v46 = vmul.f32 %v271_v43, %v339_v2 }
  0xa7   :  { %252 = vmatprep.mubr.msk.f32.mxu0 %vm31_vm0, %v81_v44  ;;  %v73_v47 = vmul.f32 %v273_v45, %v22_v6 }
  0xa8   :  { %v84_v48 = vmul.f32 %v234_v38, %v72_v46 }
  0xa9   :  { %v275_v49 = vpop.eup %274  ;;  %v85_v50 = vmul.f32 %v234_v38, %v73_v47 }
  0xaa   :  { %v277_v51 = vpop.eup %276  ;;  %256 = vmatmul.mubr.msk.f32.vlgmr.msra.gmra.mrb[0].mxu1 %vm31_vm0, %v84_v48  ;;  %v70_v52 = vmul.f32 %v275_v49, %v349_v8 }
  0xab   :  { %258 = vmatprep.mubr.msk.f32.mxu1 %vm31_vm0, %v85_v50  ;;  %v74_v53 = vmul.f32 %v277_v51, %v354_v9 }
  0xac   :  { %v82_v54 = vmul.f32 %v234_v38, %v70_v52 }
  0xad   :  { %v86_v55 = vmul.f32 %v234_v38, %v74_v53 }
  0xae   :  { %253 = vmatmul.mubr.msk.f32.vlgmr.msra.gmra.mrb[0].mxu0 %vm31_vm0, %v82_v54 }
  0xaf   :  { %259 = vmatmul.mubr.msk.f32.gmra.mrb[2].mxu1 %vm31_vm0, %v86_v55 }
 0x17d   :  { %v257_v57 = vpop.f32.mrb[0].mxu1 }
 0x17e   :  { %v199_v58 = vadd.f32 %v257_v57, %v235_v56  ;;  %v193_v59 = vpop.f32.mrb[1].mxu1 }
 0x17f   :  { %v194_v60 = vadd.f32 %v235_v56, %v193_v59 }
 0x180   :  { %215 = vst [vmem:[#allocation2 + $0x18] sm:$0xff] %v199_v58 }
 0x181   :  { %214 = vst [vmem:[#allocation2 + $0x10] sm:$0xff] %v194_v60  ;;  %v254_v61 = vpop.f32.mrb[0].mxu0 }
 0x182   :  { %v189_v62 = vadd.f32 %v254_v61, %v235_v56  ;;  %v260_v63 = vpop.f32.mrb[2].mxu1  ;;  %v183_v0 = vpop.f32.mrb[1].mxu0 }
 0x183   :  { %v209_v1 = vadd.f32 %v260_v63, %v235_v56  ;;  %v184_v2 = vadd.f32 %v235_v56, %v183_v0  ;;  %v203_v3 = vpop.f32.mrb[3].mxu1 }
 0x184   :  { %213 = vst [vmem:[#allocation2 + $0x8] sm:$0xff] %v189_v62  ;;  %v204_v4 = vadd.f32 %v235_v56, %v203_v3 }
 0x185   :  { %217 = vst [vmem:[#allocation2 + $0x28] sm:$0xff] %v209_v1  ;;  %212 = vst [vmem:[#allocation2] sm:$0xff] %v184_v2 }
 0x186   :  { %216 = vst [vmem:[#allocation2 + $0x20] sm:$0xff] %v204_v4 }
 0x187   :  { %289 = shalt.err (!%p286_p4)
}
 0x188   :  { %s290_s8 = scalar_lea.hbm %s400_s4, 768 }
 0x189   :  { %p291_p5 = scmp.ne.s32.totalorder %s400_s4, %s290_s8  ;;  %p294_p6 = scmp.lt.u32.totalorder %s290_s8, %s400_s4 }
 0x18b   :  { %p296_p7 = pnand %p294_p6, %p291_p5 }
 0x18d   :  { %299 = shalt.err (!%p296_p7)
}
 0x18e   :  { %s303_s13 = smov 128   ;;  %s304_s14 = smov 8  }
 0x18f   :  { %229 = dma.vmem_to_hbm [thread:$0]  %s224_s5, 768, %s400_s4, [#allocation3], %s303_s13, %s303_s13, %s304_s14  }
 0x190   :  { %300 = dma.done.wait [#allocation3], 768  }
 0x191   :  { %301 = vsyncadd [#allocation3], 4294966528 }
 0x192   :  { %233 = vsyncpa [#allocation3], 1 }

</bundles_post_ra>
